<compile_context>
chip_gen: v5e
topology: v5e:2x2
jax: 0.10.0
libtpu: 0.0.40
codegen_flags: <defaults>
</compile_context>

<pallas_src>
import jax
import jax.numpy as jnp
from jax.experimental import pallas as pl
from jax.experimental.pallas import tpu as pltpu


_VMEM_LIMIT_BYTES = 48 * 1024 * 1024   # > v5e's 16 MiB scoped default, < v7x physical


# ----------------------------------------------------------------------------
# small helpers (tile selection + zero padding)
# ----------------------------------------------------------------------------
def _round_up(x, m):
    return ((x + m - 1) // m) * m


def _pick_tile(size, cap, align):
    """Return (tile, padded_size) for one dimension.

    `align` is 128 for lane dims / 8 (or 16 for packed dtypes) for sublane
    dims; `cap` is a multiple of `align`.  Small dims get a single block
    rounded up to `align` (lane-dense); large dims tile at `cap`.
    """
    if size <= cap:
        t = _round_up(size, align)
        return t, t
    return cap, _round_up(size, cap)


def _pad_to(a, target_shape):
    pads = [(0, t - s) for s, t in zip(a.shape, target_shape)]
    if all(p == (0, 0) for p in pads):
        return a
    return jnp.pad(a, pads)


def _sublane_align(dtype):
    return 8 if jnp.dtype(dtype).itemsize >= 4 else 16


# ----------------------------------------------------------------------------
# Pallas kernels
# ----------------------------------------------------------------------------
def _linear_matmul_kernel(x_ref, w_ref, b_ref, o_ref, acc_ref):
    """Tile of  o = x @ w_t + bias   (w_t = (weight*mask).T, pre-transposed).
    x:[tm,tk]  w_t:[tk,tn]  b:[1,tn] f32  o:[tm,tn]  acc:[tm,tn] f32."""
    @pl.when(pl.program_id(2) == 0)
    def _init():
        acc_ref[...] = jnp.zeros_like(acc_ref)

    acc_ref[...] += jnp.dot(x_ref[...], w_ref[...],
                            preferred_element_type=jnp.float32)

    @pl.when(pl.program_id(2) == pl.num_programs(2) - 1)
    def _finalize():
        o_ref[...] = (acc_ref[...] + b_ref[...]).astype(o_ref.dtype)


def _conv_batched_kernel(p_ref, w_ref, b_ref, o_ref, acc_ref):
    """Per-(batch, out-tile, M-tile) im2col matmul:  o = w_eff @ p + bias.
    p:[1,tk,tm]  w:[to,tk]  b:[to,1] f32  o:[1,to,tm]  acc:[to,tm] f32."""
    @pl.when(pl.program_id(3) == 0)
    def _init():
        acc_ref[...] = jnp.zeros_like(acc_ref)

    acc_ref[...] += jax.lax.dot_general(
        w_ref[...], p_ref[0],
        dimension_numbers=(((1,), (0,)), ((), ())),
        preferred_element_type=jnp.float32,
    )

    @pl.when(pl.program_id(3) == pl.num_programs(3) - 1)
    def _finalize():
        o_ref[0] = (acc_ref[...] + b_ref[...]).astype(o_ref.dtype)


def _conv_folded_kernel(p_ref, w_ref, b_ref, o_ref, acc_ref):
    """Batch folded into the lane dim:  o[out, N*M] = w_eff @ p + bias.
    p:[tk,tm]  w:[to,tk]  b:[to,1] f32  o:[to,tm]  acc:[to,tm] f32."""
    @pl.when(pl.program_id(2) == 0)
    def _init():
        acc_ref[...] = jnp.zeros_like(acc_ref)

    acc_ref[...] += jax.lax.dot_general(
        w_ref[...], p_ref[...],
        dimension_numbers=(((1,), (0,)), ((), ())),
        preferred_element_type=jnp.float32,
    )

    @pl.when(pl.program_id(2) == pl.num_programs(2) - 1)
    def _finalize():
        o_ref[...] = (acc_ref[...] + b_ref[...]).astype(o_ref.dtype)


# ----------------------------------------------------------------------------
# Linear wrapper
# ----------------------------------------------------------------------------
def piggyback_linear(x, weight, mask, bias, *, compute_dtype=None):
    """x:[B,in]  weight,mask:[out,in]  bias:[out]  ->  [B,out]"""
    B, in_f = x.shape
    out_f, _ = weight.shape
    if compute_dtype is None:
        compute_dtype = x.dtype
    if bias is None:
        bias = jnp.zeros((out_f,), jnp.float32)

    # Mask multiply + transpose fused once in the wrapper: kernel sees the
    # MXU-native [tk, tn] RHS (contraction on the sublane dim, no relayout).
    w_eff = weight if mask is None else weight * mask
    w_t = w_eff.T.astype(compute_dtype)                 # [in_f, out_f]
    x_c = x.astype(compute_dtype)
    b2d = bias.reshape(1, out_f).astype(jnp.float32)

    sub = _sublane_align(compute_dtype)
    tm, B_p = _pick_tile(B, 512, sub)        # batch rows   (sublane)
    tn, out_p = _pick_tile(out_f, 512, 128)  # out features (lane-dense)
    tk, in_p = _pick_tile(in_f, 1024, 128)   # contraction  (zero-padded)

    # v7x megacore: keep >= 2 parallel tiles when it is legal to split.
    if (B_p // tm) * (out_p // tn) == 1:
        if tn >= 256 and tn % 256 == 0:
            tn //= 2
        elif tm >= 2 * sub and tm % (2 * sub) == 0:
            tm //= 2

    x_p = _pad_to(x_c, (B_p, in_p))
    w_p = _pad_to(w_t, (in_p, out_p))
    b_p = _pad_to(b2d, (1, out_p))

    grid = (B_p // tm, out_p // tn, in_p // tk)

    out = pl.pallas_call(
        _linear_matmul_kernel,
        out_shape=jax.ShapeDtypeStruct((B_p, out_p), x.dtype),
        grid_spec=pltpu.PrefetchScalarGridSpec(
            num_scalar_prefetch=0,
            grid=grid,
            in_specs=[
                pl.BlockSpec((tm, tk), lambda i, j, k: (i, k)),
                pl.BlockSpec((tk, tn), lambda i, j, k: (k, j)),
                pl.BlockSpec((1, tn), lambda i, j, k: (0, j)),
            ],
            out_specs=pl.BlockSpec((tm, tn), lambda i, j, k: (i, j)),
            scratch_shapes=[pltpu.VMEM((tm, tn), jnp.float32)],
        ),
        compiler_params=pltpu.CompilerParams(
            dimension_semantics=("parallel", "parallel", "arbitrary"),
            vmem_limit_bytes=_VMEM_LIMIT_BYTES),
    )(x_p, w_p, b_p)
    return out[:B, :out_f]


# ----------------------------------------------------------------------------
# Conv2d wrapper (im2col + tiled masked matmul)
# ----------------------------------------------------------------------------
def _im2col_5d(x, kh, kw, stride, padding, dilation):
    """NCHW -> tap stack [N, C, kh*kw, H_out, W_out]."""
    N, C, H, W = x.shape
    xp = jnp.pad(x, ((0, 0), (0, 0), (padding, padding), (padding, padding)))
    H_out = (H + 2 * padding - dilation * (kh - 1) - 1) // stride + 1
    W_out = (W + 2 * padding - dilation * (kw - 1) - 1) // stride + 1
    cols = []
    for i in range(kh):
        for j in range(kw):
            di, dj = i * dilation, j * dilation
            cols.append(
                xp[:, :, di:di + stride * H_out:stride, dj:dj + stride * W_out:stride]
            )  # [N, C, H_out, W_out]
    p = jnp.stack(cols, axis=2)                       # [N, C, kh*kw, Ho, Wo]
    return p, H_out, W_out


def piggyback_conv2d(x, weight, mask, bias, *, stride=1, padding=0, dilation=1,
                     compute_dtype=None):
    """NCHW conv with masked weights (groups=1).
    x:[N,C,H,W]  weight,mask:[out,C,kh,kw]  bias:[out] -> [N,out,H_out,W_out]"""
    # TODO(synk): groups > 1 not implemented (module default is groups=1).
    N, C, H, W = x.shape
    out_ch, _, kh, kw = weight.shape
    if compute_dtype is None:
        compute_dtype = x.dtype
    if bias is None:
        bias = jnp.zeros((out_ch,), jnp.float32)

    p5, H_out, W_out = _im2col_5d(x, kh, kw, stride, padding, dilation)
    M = H_out * W_out
    K = C * kh * kw

    # Hoisted mask multiply (single fused elementwise pass in the wrapper).
    w_eff = weight if mask is None else weight * mask
    w2d = w_eff.reshape(out_ch, K).astype(compute_dtype)
    b2d = bias.reshape(out_ch, 1).astype(jnp.float32)

    to, out_p = _pick_tile(out_ch, 512, 8)   # output channels (sublane)
    tk, K_p = _pick_tile(K, 1024, 128)       # contraction (zero-padded)

    fold_batch = (M < 256) and (N > 1)

    if fold_batch:
        # Small feature maps: fold batch into the lane dim -> full MXU columns.
        NM = N * M
        p2d = p5.transpose(1, 2, 0, 3, 4).reshape(K, NM).astype(compute_dtype)
        tm, NM_p = _pick_tile(NM, 512, 128)  # lane-dense spatial*batch

        if (out_p // to) * (NM_p // tm) == 1:   # v7x megacore guard
            if tm >= 256 and tm % 256 == 0:
                tm //= 2
            elif to >= 16 and to % 16 == 0:
                to //= 2

        p_pad = _pad_to(p2d, (K_p, NM_p))
        w_pad = _pad_to(w2d, (out_p, K_p))
        b_pad = _pad_to(b2d, (out_p, 1))

        grid = (out_p // to, NM_p // tm, K_p // tk)

        o = pl.pallas_call(
            _conv_folded_kernel,
            out_shape=jax.ShapeDtypeStruct((out_p, NM_p), x.dtype),
            grid_spec=pltpu.PrefetchScalarGridSpec(
                num_scalar_prefetch=0,
                grid=grid,
                in_specs=[
                    pl.BlockSpec((tk, tm), lambda jo, jm, jk: (jk, jm)),
                    pl.BlockSpec((to, tk), lambda jo, jm, jk: (jo, jk)),
                    pl.BlockSpec((to, 1), lambda jo, jm, jk: (jo, 0)),
                ],
                out_specs=pl.BlockSpec((to, tm), lambda jo, jm, jk: (jo, jm)),
                scratch_shapes=[pltpu.VMEM((to, tm), jnp.float32)],
            ),
            compiler_params=pltpu.CompilerParams(
                dimension_semantics=("parallel", "parallel", "arbitrary"),
                vmem_limit_bytes=_VMEM_LIMIT_BYTES),
        )(p_pad, w_pad, b_pad)

        o = o[:out_ch, :NM].reshape(out_ch, N, H_out, W_out)
        return jnp.transpose(o, (1, 0, 2, 3))

    # Large feature maps: keep per-image [K, M] panels (M lane-dense).
    patches = p5.reshape(N, K, M).astype(compute_dtype)
    tm, M_p = _pick_tile(M, 512, 128)

    if N * (out_p // to) * (M_p // tm) == 1:    # v7x megacore guard
        if tm >= 256 and tm % 256 == 0:
            tm //= 2
        elif to >= 16 and to % 16 == 0:
            to //= 2

    p_pad = _pad_to(patches, (N, K_p, M_p))
    w_pad = _pad_to(w2d, (out_p, K_p))
    b_pad = _pad_to(b2d, (out_p, 1))

    grid = (N, out_p // to, M_p // tm, K_p // tk)

    o = pl.pallas_call(
        _conv_batched_kernel,
        out_shape=jax.ShapeDtypeStruct((N, out_p, M_p), x.dtype),
        grid_spec=pltpu.PrefetchScalarGridSpec(
            num_scalar_prefetch=0,
            grid=grid,
            in_specs=[
                pl.BlockSpec((1, tk, tm), lambda n, jo, jm, jk: (n, jk, jm)),
                pl.BlockSpec((to, tk), lambda n, jo, jm, jk: (jo, jk)),
                pl.BlockSpec((to, 1), lambda n, jo, jm, jk: (jo, 0)),
            ],
            out_specs=pl.BlockSpec((1, to, tm), lambda n, jo, jm, jk: (n, jo, jm)),
            scratch_shapes=[pltpu.VMEM((to, tm), jnp.float32)],
        ),
        compiler_params=pltpu.CompilerParams(
            dimension_semantics=("parallel", "parallel", "parallel", "arbitrary"),
            vmem_limit_bytes=_VMEM_LIMIT_BYTES),
    )(p_pad, w_pad, b_pad)

    o = o[:, :out_ch, :M]
    return o.reshape(N, out_ch, H_out, W_out)


# ----------------------------------------------------------------------------
# Demo / correctness check
# ----------------------------------------------------------------------------
if __name__ == "__main__":
    key = jax.random.PRNGKey(0)
    k1, k2, k3, k4, k5, k6, k7 = jax.random.split(key, 7)

    # ---- Conv2d, large feature map (batched path): 16x16, s=1, p=1 ---------
    x_conv = jax.random.normal(k1, (2, 4, 16, 16), dtype=jnp.float32)
    w_conv = jax.random.normal(k2, (8, 4, 3, 3), dtype=jnp.float32) * 0.1
    b_conv = jax.random.normal(k3, (8,), dtype=jnp.float32) * 0.1
    mask_conv = jnp.full(w_conv.shape, 0.1, dtype=jnp.float32)   # add_task()

    o_conv = piggyback_conv2d(x_conv, w_conv, mask_conv, b_conv,
                              stride=1, padding=1, dilation=1)
    o_conv = jax.block_until_ready(o_conv)

    ref_conv = jax.lax.conv_general_dilated(
        x_conv, w_conv * mask_conv,
        window_strides=(1, 1), padding=((1, 1), (1, 1)),
        dimension_numbers=("NCHW", "OIHW", "NCHW"),
    ) + b_conv.reshape(1, 8, 1, 1)
    assert jnp.allclose(o_conv, ref_conv, atol=1e-4, rtol=1e-4), "conv mismatch"

    # ---- Conv2d, small feature map (batch-folded path): 8x8, s=2, p=1 ------
    x_cs = jax.random.normal(k7, (2, 4, 8, 8), dtype=jnp.float32)
    o_cs = piggyback_conv2d(x_cs, w_conv, mask_conv, b_conv,
                            stride=2, padding=1, dilation=1)
    o_cs = jax.block_until_ready(o_cs)

    ref_cs = jax.lax.conv_general_dilated(
        x_cs, w_conv * mask_conv,
        window_strides=(2, 2), padding=((1, 1), (1, 1)),
        dimension_numbers=("NCHW", "OIHW", "NCHW"),
    ) + b_conv.reshape(1, 8, 1, 1)
    assert jnp.allclose(o_cs, ref_cs, atol=1e-4, rtol=1e-4), "folded conv mismatch"

    # ---- Conv2d in bf16 compute (recommended perf path; loose tolerance) ----
    o_bf16 = piggyback_conv2d(x_conv, w_conv, mask_conv, b_conv,
                              stride=1, padding=1, dilation=1,
                              compute_dtype=jnp.bfloat16)
    o_bf16 = jax.block_until_ready(o_bf16)
    assert o_bf16.shape == ref_conv.shape
    assert bool(jnp.all(jnp.isfinite(o_bf16)))
    assert jnp.allclose(o_bf16, ref_conv, atol=5e-2, rtol=5e-2), "bf16 conv mismatch"

    # ---- Linear case: in=32, out=16 -----------------------------------------
    x_lin = jax.random.normal(k4, (2, 32), dtype=jnp.float32)
    w_lin = jax.random.normal(k5, (16, 32), dtype=jnp.float32) * 0.1
    b_lin = jax.random.normal(k6, (16,), dtype=jnp.float32) * 0.1
    mask_lin = jnp.full(w_lin.shape, 0.1, dtype=jnp.float32)     # add_task()

    o_lin = piggyback_linear(x_lin, w_lin, mask_lin, b_lin)
    o_lin = jax.block_until_ready(o_lin)

    ref_lin = x_lin @ (w_lin * mask_lin).T + b_lin
    assert jnp.allclose(o_lin, ref_lin, atol=1e-4, rtol=1e-4), "linear mismatch"

    print("KERNEL_OK")
</pallas_src>

<mosaic_0001>
module attributes {stable_mosaic.version = 11 : i64} {
  func.func @_conv_batched_kernel(%arg0: i32, %arg1: i32, %arg2: i32, %arg3: i32, %arg4: memref<1x128x256xf32, #tpu.memory_space<vmem>>, %arg5: memref<8x128xf32, #tpu.memory_space<vmem>>, %arg6: memref<8x1xf32, #tpu.memory_space<vmem>>, %arg7: memref<1x8x256xf32, #tpu.memory_space<vmem>>, %arg8: memref<8x256xf32, #tpu.memory_space<vmem>>) attributes {dimension_semantics = [#tpu.dimension_semantics<parallel>, #tpu.dimension_semantics<parallel>, #tpu.dimension_semantics<parallel>, #tpu.dimension_semantics<arbitrary>], iteration_bounds = array<i64: 2, 1, 1, 1>, scalar_prefetch = 0 : i64, scratch_operands = 1 : i64, tpu.core_type = #tpu.core_type<tc>, window_params = [{transform_indices = @transform_0, window_bounds = array<i64: 1, 128, 256>}, {transform_indices = @transform_1, window_bounds = array<i64: 8, 128>}, {transform_indices = @transform_2, window_bounds = array<i64: 8, 1>}, {transform_indices = @transform_3, window_bounds = array<i64: 1, 8, 256>}]} {
    %c0_i32 = arith.constant 0 : i32
    %0 = arith.cmpi eq, %arg3, %c0_i32 : i32
    %1 = arith.extui %0 : i1 to i32
    %c0_i32_0 = arith.constant 0 : i32
    %2 = arith.cmpi ne, %1, %c0_i32_0 : i32
    scf.if %2 {
      %cst_11 = arith.constant 0.000000e+00 : f32
      %13 = vector.broadcast %cst_11 : f32 to vector<8x256xf32>
      %c0_12 = arith.constant 0 : index
      %c0_13 = arith.constant 0 : index
      %14 = vector.load %arg8[%c0_12, %c0_13] : memref<8x256xf32, #tpu.memory_space<vmem>>, vector<8x256xf32>
      tpu.vector_store %arg8[%c0_12, %c0_13], %13 {strides = array<i32>} : memref<8x256xf32, #tpu.memory_space<vmem>>, vector<8x256xf32>,
    } else {
    }
    %c0 = arith.constant 0 : index
    %c0_1 = arith.constant 0 : index
    %3 = vector.load %arg8[%c0, %c0_1] : memref<8x256xf32, #tpu.memory_space<vmem>>, vector<8x256xf32>
    %c0_2 = arith.constant 0 : index
    %c0_3 = arith.constant 0 : index
    %4 = vector.load %arg5[%c0_2, %c0_3] : memref<8x128xf32, #tpu.memory_space<vmem>>, vector<8x128xf32>
    %c0_4 = arith.constant 0 : index
    %c0_5 = arith.constant 0 : index
    %c0_6 = arith.constant 0 : index
    %5 = vector.load %arg4[%c0_4, %c0_5, %c0_6] : memref<1x128x256xf32, #tpu.memory_space<vmem>>, vector<1x128x256xf32>
    %6 = vector.shape_cast %5 : vector<1x128x256xf32> to vector<128x256xf32>
    %cst = arith.constant dense<0.000000e+00> : vector<8x256xf32>
    %7 = tpu.matmul %4, %6, %cst {dimension_numbers = #tpu.dot_dimension_numbers<[1], [0], [0], [1], [0, 0, 1, 1], [], []>} : vector<8x128xf32>, vector<128x256xf32>, vector<8x256xf32> -> vector<8x256xf32>
    %8 = arith.addf %3, %7 : vector<8x256xf32>
    %c0_7 = arith.constant 0 : index
    %c0_8 = arith.constant 0 : index
    %9 = vector.load %arg8[%c0_7, %c0_8] : memref<8x256xf32, #tpu.memory_space<vmem>>, vector<8x256xf32>
    tpu.vector_store %arg8[%c0_7, %c0_8], %8 {strides = array<i32>} : memref<8x256xf32, #tpu.memory_space<vmem>>, vector<8x256xf32>,
    %c0_i32_9 = arith.constant 0 : i32
    %10 = arith.cmpi eq, %arg3, %c0_i32_9 : i32
    %11 = arith.extui %10 : i1 to i32
    %c0_i32_10 = arith.constant 0 : i32
    %12 = arith.cmpi ne, %11, %c0_i32_10 : i32
    scf.if %12 {
      %c0_11 = arith.constant 0 : index
      %c0_12 = arith.constant 0 : index
      %13 = vector.load %arg8[%c0_11, %c0_12] : memref<8x256xf32, #tpu.memory_space<vmem>>, vector<8x256xf32>
      %c0_13 = arith.constant 0 : index
      %c0_14 = arith.constant 0 : index
      %14 = vector.load %arg6[%c0_13, %c0_14] : memref<8x1xf32, #tpu.memory_space<vmem>>, vector<8x1xf32>
      %15 = vector.broadcast %14 : vector<8x1xf32> to vector<8x256xf32>
      %16 = arith.addf %13, %15 : vector<8x256xf32>
      %c0_15 = arith.constant 0 : index
      %c0_16 = arith.constant 0 : index
      %c0_17 = arith.constant 0 : index
      %17 = vector.load %arg7[%c0_15, %c0_16, %c0_17] : memref<1x8x256xf32, #tpu.memory_space<vmem>>, vector<1x8x256xf32>
      %18 = vector.shape_cast %17 : vector<1x8x256xf32> to vector<8x256xf32>
      %19 = vector.shape_cast %16 : vector<8x256xf32> to vector<1x8x256xf32>
      tpu.vector_store %arg7[%c0_15, %c0_16, %c0_17], %19 {strides = array<i32>} : memref<1x8x256xf32, #tpu.memory_space<vmem>>, vector<1x8x256xf32>,
    } else {
    }
    return
  }
  func.func @transform_0(%arg0: i32, %arg1: i32, %arg2: i32, %arg3: i32) -> (i32, i32, i32) {
    %c0_i32 = arith.constant 0 : i32
    return %arg0, %arg3, %arg2 : i32, i32, i32
  }
  func.func @transform_1(%arg0: i32, %arg1: i32, %arg2: i32, %arg3: i32) -> (i32, i32) {
    %c0_i32 = arith.constant 0 : i32
    return %arg1, %arg3 : i32, i32
  }
  func.func @transform_2(%arg0: i32, %arg1: i32, %arg2: i32, %arg3: i32) -> (i32, i32) {
    %c0_i32 = arith.constant 0 : i32
    %c0_i32_0 = arith.constant 0 : i32
    return %arg1, %c0_i32 : i32, i32
  }
  func.func @transform_3(%arg0: i32, %arg1: i32, %arg2: i32, %arg3: i32) -> (i32, i32, i32) {
    %c0_i32 = arith.constant 0 : i32
    return %arg0, %arg1, %arg2 : i32, i32, i32
  }
}

</mosaic_0001>

<bundles_post_ra>
// kernel: tpu_custom_call.1
= control target key start
LH: loop header
LB: loop body
LE: loop exit
PB: predicated region body
PF: predicated region fallthrough
CT: control target
= control target key end

     0   :  { %8 = vsyncpa [#allocation4], 0  ;;  %s909_s0 = inlined_call_operand.hbm [shape: f32[2,128,256], index: 0, kind: input, shape index: {}]   ;;  %s910_s1 = inlined_call_operand.vmem [shape: f32[8,128], index: 1, kind: input, shape index: {}]   ;;  %s911_s2 = inlined_call_operand.vmem [shape: f32[8,1], index: 2, kind: input, shape index: {}]   ;;  %s912_s3 = inlined_call_operand.hbm [shape: f32[2,8,256], index: 3, kind: output, shape index: {}]  }
   0x1   :  { %10 = vsyncpa [#allocation4 + $0x1], 0 }
   0x2   :  { %11 = vsyncpa [#allocation5], 0 }
   0x3   :  { %13 = vsyncpa [#allocation5 + $0x1], 0  ;;  %s748_s12 = smov 0   ;;  %s750_s13 = smov 0  }
   0x4   :  { %s752_s14 = smov 0   ;;  %s754_s15 = smov 0  }
   0x5   :  { %s756_s16 = smov 0   ;;  %s758_s17 = smov 0  }
   0x6 LB: > { %s526_s18 = sadd.s32 4294967295, %s723_s17   ;;  %s527_s19 = sadd.s32 4294967294, %s723_s17   ;;  %s723_s17 = sphi %s758_s17, %s19_s17   ;;  %s719_s16 = sphi %s756_s16, %s921_s16   ;;  %s715_s15 = sphi %s754_s15, %s920_s15   ;;  %s711_s14 = sphi %s752_s14, %s919_s14   ;;  %s707_s13 = sphi %s750_s13, %s918_s13   ;;  %s703_s12 = sphi %s748_s12, %s917_s12  }
   0x7   : > { %s45_s20 = sadd.s32 1, %s719_s16  ;;  %s56_s21 = sadd.s32 1, %s711_s14 }
   0x8   : > { %p47_p0 = scmp.ge.s32.totalorder %s45_s20, 2  ;;  %p63_p1 = scmp.ne.s32.totalorder %s711_s14, %s707_s13 }
   0x9   : > { %p64_p2 = scmp.eq.s32.totalorder %s723_s17, 0  ;;  %p69_p3 = scmp.ne.s32.totalorder %s707_s13, %s703_s12 }
   0xa   : > { %s923_s20 = smov (%p47_p0, %s45_s20), 0  ;;  %p70_p5 = scmp.eq.s32.totalorder %s526_s18, 0 }
   0xb   : > { %p789_p4 = por %p64_p2, %p63_p1  ;;  %s49_s23 = ssub.s32 %s719_s16, %s923_s20 }
   0xc   : > { %p151_p6 = scmp.eq.s32.totalorder %s526_s18, 1  ;;  %p54_p7 = scmp.eq.s32.totalorder %s49_s23, 0 }
   0xd   : > { %p795_p8 = por %p70_p5, %p69_p3  ;;  %p157_p10 = scmp.eq.s32.totalorder %s527_s19, 1 }
   0xe   : > { %p799_p9 = por %p151_p6, %p63_p1  ;;  %p531_p12 = scmp.ge.s32.totalorder %s723_s17, 2 }
   0xf   : > { %s804_s26 = scalar_select %p54_p7, %s711_s14, %s56_s21  }
  0x10   : > { %p806_p11 = por %p157_p10, %p69_p3  ;;  %p557_p13 = scmp.lt.s32.totalorder %s723_s17, 2 }
  0x11   : > { %s194_s28 = sand.u32 1, %s711_s14   ;;  %s543_s30 = sshll.u32 %s719_s16, 8 }
  0x12   : > { %s532_s29 = sshll.u32 %s194_s28, 8  ;;  %s208_s6 = scalar_lea.hbm %s909_s0, %s543_s30 }
  0x13   : > { %s198_s7 = scalar_lea.vmem [#allocation3], %s532_s29  ;;  %s209_s9 = sshll.u32 %s208_s6, 4  ;;  %s210_s9 = int_to_ptr.hbm [resolvable:$true] %s209_s9 }
  0x14   : > { %s211_s8 = sshll.u32 %s198_s7, 4  ;;  %p550_p0 = pnand %p557_p13, %p789_p4  ;;  %s212_s8 = int_to_ptr.vmem [resolvable:$true] %s211_s8 }
  0x15   : > { %p535_p1 = scmp.ge.s32.totalorder %s723_s17, 1  ;;  %s195_s10 = scalar_lea.sflag [#allocation4], %s194_s28 }
  0x16   : > { %s725_s11 = smov 256   ;;  %s726_s18 = smov 16  }
  0x17   : > { %552 = dma.hbm_to_vmem [thread:$0]  (!%p550_p0), %s210_s9, 4096, %s212_s8, %s195_s10, %s725_s11, %s725_s11, %s726_s18  }
  0x18   : > { %p219_p2 = scmp.lt.s32.totalorder %s723_s17, 3 }
  0x1a   : > { %p220_p3 = pnand %p535_p1, %p219_p2 }
  0x1b   : > { %s822_s19 = sand.u32 (!%p220_p3), 1, %s707_s13  }
  0x1c   : > { %223 = sbr.rel (%p220_p3) target bundleno = 198 (0xc6), region = 32  ;;  %s536_s21 = sshll.u32 (!%p220_p3), %s822_s19, 8 }
  0x1d   : > { %s226_s23 = scalar_lea.sflag (!%p220_p3), [#allocation4], %s822_s19  ;;  %s826_s29 = scalar_lea.vmem (!%p220_p3), [#allocation3], %s536_s21 }
  0x21   : > { %694 = dma.done.wait (%p795_p8), %s226_s23, 4096  }
  0x22   : > { %696 = vsyncadd (%p795_p8), %s226_s23, 4294963200  ;;  %v317_v0 = vld [vmem:[%s826_s29 + $0xf0] sm:$0xff]  ;;  %v318_v1 = vld [vmem:[%s826_s29 + $0xf8] sm:$0xff]  ;;  %v727_v6 = vmov 0   ;;  %s537_s4 = sshll.u32 %s822_s19, 4  ;;  %s544_s5 = sshll.u32 %s715_s15, 4 }
  0x23   : > { %v315_v2 = vld [vmem:[%s826_s29 + $0xe0] sm:$0xff]  ;;  %319 = vmatpush.msra.mxu0 %v317_v0  ;;  %339 = vmatpush.msra.mxu1 %v318_v1  ;;  %v316_v3 = vld [vmem:[%s826_s29 + $0xe8] sm:$0xff]  ;;  %v313_v4 = vld [vmem:[%s826_s29 + $0xd0] sm:$0xff]  ;;  %s394_s8 = scalar_lea.hbm %s912_s3, %s544_s5  ;;  %s263_s9 = scalar_lea.vmem [#allocation6], %s537_s4 }
  0x24   : > { %v314_v5 = vld [vmem:[%s826_s29 + $0xd8] sm:$0xff]  ;;  %610 = vset.pattern.permute.xlu0 %v727_v6  ;;  %v311_v7 = vld [vmem:[%s826_s29 + $0xc0] sm:$0xff]  ;;  %v312_v8 = vld [vmem:[%s826_s29 + $0xc8] sm:$0xff]  ;;  %s396_s10 = sshll.u32 %s263_s9, 4  ;;  %s398_s11 = sshll.u32 %s394_s8, 4  ;;  %s397_s10 = int_to_ptr.vmem [resolvable:$true] %s396_s10  ;;  %s399_s11 = int_to_ptr.hbm [resolvable:$true] %s398_s11 }
  0x25   : > { %320 = vmatpush.msra.mxu0 %v315_v2  ;;  %340 = vmatpush.msra.mxu1 %v316_v3  ;;  %v309_v9 = vld [vmem:[%s826_s29 + $0xb0] sm:$0xff]  ;;  %v310_v10 = vld [vmem:[%s826_s29 + $0xb8] sm:$0xff]  ;;  %v307_v11 = vld [vmem:[%s826_s29 + $0xa0] sm:$0xff]  ;;  %s379_s18 = scalar_lea.sflag [#allocation5], %s822_s19  ;;  %s655_s21 = sshra.s32 %s399_s11, 4  ;;  %s656_s21 = int_to_ptr.hbm [resolvable:$true] %s655_s21 }
  0x26   : > { %v308_v12 = vld [vmem:[%s826_s29 + $0xa8] sm:$0xff]  ;;  %v305_v13 = vld [vmem:[%s826_s29 + $0x90] sm:$0xff]  ;;  %v306_v14 = vld [vmem:[%s826_s29 + $0x98] sm:$0xff]  ;;  %s657_s15 = scalar_lea.hbm %s656_s21, 16  ;;  %s661_s22 = scalar_lea.hbm %s912_s3, 32 }
  0x27   : > { %321 = vmatpush.msra.mxu0 %v313_v4  ;;  %341 = vmatpush.msra.mxu1 %v314_v5  ;;  %v368_v15 = vld [vmem:[%s911_s2] sm:$0xff]  ;;  %v304_v17 = vld [vmem:[%s826_s29 + $0x88] sm:$0xff]  ;;  %v301_v18 = vld [vmem:[%s826_s29 + $0x70] sm:$0xff]  ;;  %p658_p4 = scmp.ne.s32.totalorder %s656_s21, %s657_s15  ;;  %p662_p7 = scmp.lt.s32.totalorder %s656_s21, %s912_s3 }
  0x28   : > { %v303_v16 = vld [vmem:[%s826_s29 + $0x80] sm:$0xff]  ;;  %371 = vperm.xlu0 %610, %v368_v15   ;;  %v302_v19 = vld [vmem:[%s826_s29 + $0x78] sm:$0xff]  ;;  %v300_v21 = vld [vmem:[%s826_s29 + $0x68] sm:$0xff]  ;;  %p663_p8 = scmp.lt.s32.totalorder %s661_s22, %s657_s15 }
  0x29   : > { %322 = vmatpush.msra.mxu0 %v311_v7  ;;  %342 = vmatpush.msra.mxu1 %v312_v8  ;;  %v299_v20 = vld [vmem:[%s826_s29 + $0x60] sm:$0xff]  ;;  %v297_v22 = vld [vmem:[%s826_s29 + $0x50] sm:$0xff]  ;;  %v298_v23 = vld [vmem:[%s826_s29 + $0x58] sm:$0xff]  ;;  %p659_p5 = pnand %p658_p4, %p799_p9 }
  0x2a   : > { %v295_v24 = vld [vmem:[%s826_s29 + $0x40] sm:$0xff]  ;;  %v296_v25 = vld [vmem:[%s826_s29 + $0x48] sm:$0xff]  ;;  %v293_v26 = vld [vmem:[%s826_s29 + $0x30] sm:$0xff]  ;;  %p664_p10 = por %p663_p8, %p662_p7 }
  0x2b   : > { %323 = vmatpush.msra.mxu0 %v309_v9  ;;  %343 = vmatpush.msra.mxu1 %v310_v10  ;;  %v294_v27 = vld [vmem:[%s826_s29 + $0x38] sm:$0xff]  ;;  %v291_v28 = vld [vmem:[%s826_s29 + $0x20] sm:$0xff]  ;;  %v292_v29 = vld [vmem:[%s826_s29 + $0x28] sm:$0xff]  ;;  %p660_p6 = pneg %p659_p5 }
  0x2c   : > { %v289_v30 = vld [vmem:[%s826_s29 + $0x10] sm:$0xff]  ;;  %v290_v31 = vld [vmem:[%s826_s29 + $0x18] sm:$0xff]  ;;  %v287_v32 = vld [vmem:[%s826_s29] sm:$0xff] }
  0x2d   : > { %324 = vmatpush.msra.mxu0 %v307_v11  ;;  %344 = vmatpush.msra.mxu1 %v308_v12  ;;  %v288_v33 = vld [vmem:[%s826_s29 + $0x8] sm:$0xff]  ;;  %v286_v34 = vld [vmem:[%s910_s1] sm:$0xff]  ;;  %p665_p13 = pnand %p664_p10, %p660_p6 }
  0x2f   : > { %325 = vmatpush.msra.mxu0 %v305_v13  ;;  %345 = vmatpush.msra.mxu1 %v306_v14 }
  0x31   : > { %326 = vmatpush.msra.mxu0 %v303_v16  ;;  %346 = vmatpush.msra.mxu1 %v304_v17 }
  0x33   : > { %327 = vmatpush.msra.mxu0 %v301_v18  ;;  %347 = vmatpush.msra.mxu1 %v302_v19 }
  0x35   : > { %328 = vmatpush.msra.mxu0 %v299_v20  ;;  %348 = vmatpush.msra.mxu1 %v300_v21 }
  0x37   : > { %329 = vmatpush.msra.mxu0 %v297_v22  ;;  %349 = vmatpush.msra.mxu1 %v298_v23 }
  0x39   : > { %330 = vmatpush.msra.mxu0 %v295_v24  ;;  %350 = vmatpush.msra.mxu1 %v296_v25 }
  0x3b   : > { %331 = vmatpush.msra.mxu0 %v293_v26  ;;  %351 = vmatpush.msra.mxu1 %v294_v27 }
  0x3d   : > { %332 = vmatpush.msra.mxu0 %v291_v28  ;;  %352 = vmatpush.msra.mxu1 %v292_v29 }
  0x3f   : > { %333 = vmatpush.msra.mxu0 %v289_v30  ;;  %353 = vmatpush.msra.mxu1 %v290_v31 }
  0x41   : > { %334 = vmatpush.msra.mxu0 %v287_v32  ;;  %354 = vmatpush.msra.mxu1 %v288_v33 }
  0x42   : > { %335 = vmatmul.f32.vlgmr.msra.gmra.mxu0 %v286_v34  ;;  %355 = vmatmul.f32.vlgmr.msra.gmra.mxu1 %v286_v34 }
  0x9a   : > { %v372_v35 = vpop.permute.xlu0 %371 }
  0xbf   : > { %v336_v36 = vpop.f32.mrf.mxu0  ;;  %v356_v37 = vpop.f32.mrf.mxu1 }
  0xc0   : > { %v374_v38 = vadd.f32 %v372_v35, %v336_v36  ;;  %v375_v39 = vadd.f32 %v372_v35, %v356_v37 }
  0xc2   : > { %376 = vst [vmem:[%s263_s9] sm:$0xff] %v374_v38 }
  0xc3   : > { %377 = vst [vmem:[%s263_s9 + $0x8] sm:$0xff] %v375_v39 }
  0xc4   : > { %668 = shalt.err (!%p665_p13)
}
  0xc5   : > { %547 = dma.vmem_to_hbm [thread:$0]  (%p799_p9), %s397_s10, 256, %s399_s11, %s379_s18  }
  0xc6 PF: > { %s410_s19 = sand.u32 1, %s703_s12   ;;  %p554_p0 = pnand %p531_p12, %p806_p11 }
  0xc7   : > { %s411_s30 = scalar_lea.sflag [#allocation5], %s410_s19 }
  0xc8   : > { %p555_p1 = pneg %p554_p0 }
  0xca   : > { %698 = dma.done.wait (%p555_p1), %s411_s30, 256  }
  0xcb   : > { %700 = vsyncadd (%p555_p1), %s411_s30, 4294967040  ;;  %s19_s17 = sadd.s32 1, %s723_s17   ;;  %s917_s12 = smov %s707_s13 }
  0xcc   : > { %p16_p2 = scmp.ge.s32.totalorder %s19_s17, 4   ;;  %s918_s13 = smov %s711_s14 }
  0xcd   : > { %s919_s14 = smov %s804_s26  ;;  %s920_s15 = smov %s719_s16 }
  0xce   : > { %s921_s16 = smov %s923_s20  ;;  %18 = sbr.rel (!%p16_p2) target bundleno = 6 (0x6), region = 91 }
  0xd3   :  { %417 = vsyncpa [#allocation4], 1 }
  0xd4   :  { %419 = vsyncpa [#allocation4 + $0x1], 1 }
  0xd5   :  { %420 = vsyncpa [#allocation5], 1 }
  0xd6   :  { %422 = vsyncpa [#allocation5 + $0x1], 1 }

</bundles_post_ra>
